<compile_context>
chip_gen: v7x
topology: tpu7x:2x2x1
jax: 0.10.0
libtpu: 0.0.40
codegen_flags: <defaults>
</compile_context>

<pallas_src>
import functools
import math

import jax
import jax.numpy as jnp
from jax import lax
from jax.experimental import pallas as pl
from jax.experimental.pallas import tpu as pltpu


def _cdiv(a, b):
    return -(-a // b)


def _min_value(dtype):
    """Dtype-aware minimum sentinel (finfo/iinfo min, not -inf)."""
    dtype = jnp.dtype(dtype)
    if jnp.issubdtype(dtype, jnp.floating):
        return float(jnp.finfo(dtype).min)
    return int(jnp.iinfo(dtype).min)


def _vmem_capacity_bytes():
    """Per-core VMEM capacity; generation-aware via get_tpu_info, 64 MiB fallback."""
    try:
        info = pltpu.get_tpu_info()
        cap = getattr(info, "vmem_capacity_bytes", None)
        if cap:
            return int(cap)
    except Exception:
        pass
    return 64 << 20  # v7x-sized conservative fallback; safe on v5e/v6e too.


# ----------------------- fused path: batch-blocked single pass ----------------------

def _fused_channel_gate_kernel(x_ref, w1_ref, b1_ref, w2_ref, b2_ref, y_ref):
    x = x_ref[...]                                           # (Bb, C, HW) native dtype
    # global max pool over spatial (no padding -> no mask needed)
    pooled = jnp.max(x, axis=-1).astype(jnp.float32)         # (Bb, C) f32
    # tiny MLP: Linear(C -> C//r) + ReLU + Linear(C//r -> C), f32
    h = jnp.dot(pooled, w1_ref[...], preferred_element_type=jnp.float32) + b1_ref[...]
    h = jnp.maximum(h, 0.0)
    att = jnp.dot(h, w2_ref[...], preferred_element_type=jnp.float32) + b2_ref[...]
    scale = jax.nn.sigmoid(att)                              # (Bb, C) f32
    y_ref[...] = (x * scale[:, :, None].astype(x.dtype)).astype(y_ref.dtype)


# ----------------------- split path: tiled pool + tiled gate ------------------------

def _max_pool_kernel(x_ref, pooled_ref, *, n_hw, rem):
    # pooled_ref: (1, C) f32 accumulator, resident across the HW grid axis.
    @pl.when(pl.program_id(1) == 0)
    def _():
        pooled_ref[...] = jnp.full(pooled_ref.shape, _min_value(jnp.float32),
                                   jnp.float32)

    def _update(x_tile):
        tile_max = jnp.max(x_tile, axis=-1).astype(jnp.float32)   # (1, C)
        pooled_ref[...] = jnp.maximum(pooled_ref[...], tile_max)

    if rem == 0:
        _update(x_ref[...])
    else:
        # Only the final (partial) tile pays for iota + compare + select.
        is_edge = pl.program_id(1) == (n_hw - 1)

        @pl.when(jnp.logical_not(is_edge))
        def _():
            _update(x_ref[...])

        @pl.when(is_edge)
        def _():
            x = x_ref[...]
            lane = lax.broadcasted_iota(jnp.int32, x.shape, 2)
            sentinel = jnp.asarray(_min_value(x.dtype), dtype=x.dtype)
            _update(jnp.where(lane < rem, x, sentinel))


def _gate_kernel(x_ref, s_ref, y_ref):
    x = x_ref[...]                                           # (1, C, HW_tile)
    s = s_ref[...]                                           # (1, C) f32, lane-dense
    y_ref[...] = (x * s[:, :, None].astype(x.dtype)).astype(y_ref.dtype)


# ------------------------------------ wrapper ---------------------------------------

def channel_gate(x_nchw, w1, b1, w2, b2, *, force_split=False, split_hw_tile=None):
    """x_nchw: (B, C, H, W). Params: w1 (C, Cr), b1 (Cr,), w2 (Cr, C), b2 (C,)."""
    B, C, H, W = x_nchw.shape
    hw = H * W
    dtype = x_nchw.dtype
    itemsize = jnp.dtype(dtype).itemsize

    x_flat = x_nchw.reshape(B, C, hw)                  # free reshape, no data movement
    w1f = w1.astype(jnp.float32)
    w2f = w2.astype(jnp.float32)
    b1f = b1.reshape(1, -1).astype(jnp.float32)
    b2f = b2.reshape(1, -1).astype(jnp.float32)
    param_bytes = 4 * (w1f.size + w2f.size + b1f.size + b2f.size)

    # Generation-aware VMEM budget: ~75% of physical per-core VMEM.
    vmem_cap = _vmem_capacity_bytes()
    budget = (vmem_cap * 3) // 4

    slab_bytes = C * hw * itemsize                     # one (1, C, HW) image slab
    fused_fits = 4 * slab_bytes + param_bytes + (1 << 20) <= budget
    # For B == 1 prefer the split path when the image is big enough to tile, so the
    # gate pass exposes >1 parallel grid point (keeps both v7x TensorCores busy).
    prefer_split_small_b = (B == 1) and (slab_bytes >= (2 << 20))
    use_fused = (not force_split) and fused_fits and not prefer_split_small_b

    if use_fused:
        # Batch-block so each streamed block is ~2-4 MiB (amortizes ~0.35us/step
        # pipeline overhead) while keeping >= 2 grid steps when B >= 2 (megacore).
        target_block = 4 << 20
        bb_budget = min(max((budget - param_bytes) // max(4 * slab_bytes, 1), 1),
                        max(target_block // max(slab_bytes, 1), 1))
        bb_cap = max(1, B // 2) if B >= 2 else 1
        bb_max = max(1, min(bb_budget, bb_cap, B))
        Bb = 1
        for d in range(bb_max, 0, -1):                 # largest divisor of B <= bb_max
            if B % d == 0:
                Bb = d
                break
        grid_b = B // Bb
        needed = 4 * Bb * slab_bytes + param_bytes + (2 << 20)
        vmem_limit = int(min(0.9 * vmem_cap, max(needed, 32 << 20)))

        y_flat = pl.pallas_call(
            _fused_channel_gate_kernel,
            out_shape=jax.ShapeDtypeStruct((B, C, hw), dtype),
            grid=(grid_b,),
            in_specs=[
                # Last two block dims span the full array dims -> exempt from (8,128),
                # so no HBM-level pad / slice is ever needed.
                pl.BlockSpec((Bb, C, hw), lambda b: (b, 0, 0)),
                pl.BlockSpec(w1f.shape, lambda b: (0, 0)),   # params stay resident
                pl.BlockSpec(b1f.shape, lambda b: (0, 0)),
                pl.BlockSpec(w2f.shape, lambda b: (0, 0)),
                pl.BlockSpec(b2f.shape, lambda b: (0, 0)),
            ],
            out_specs=pl.BlockSpec((Bb, C, hw), lambda b: (b, 0, 0)),
            compiler_params=pltpu.CompilerParams(
                dimension_semantics=("parallel",),
                vmem_limit_bytes=vmem_limit),
        )(x_flat, w1f, b1f, w2f, b2f)
        return y_flat.reshape(B, C, H, W)

    # ---------------------------------- split path ----------------------------------
    # hw_tile from the VMEM budget: 4 * C * hw_tile * itemsize (in + out, double
    # buffered) must fit the budget; no rounding of hw -- edge tile is masked.
    if split_hw_tile is not None:
        assert split_hw_tile % 128 == 0, "split_hw_tile must be a multiple of 128"
        hw_tile = split_hw_tile
    else:
        hw_tile = max(128, ((budget // (4 * C * itemsize)) // 128) * 128)
    if hw <= hw_tile:
        hw_tile, n_hw, rem = hw, 1, 0                  # single full-extent tile
    else:
        n_hw = _cdiv(hw, hw_tile)
        rem = hw % hw_tile                             # mask only the edge tile
    block_bytes = C * hw_tile * itemsize
    vmem_limit = int(min(0.9 * vmem_cap, max(4 * block_bytes + (4 << 20), 32 << 20)))

    # (1) tiled global max pool -> (B, C) f32, lane-dense (1, C) output blocks.
    pooled = pl.pallas_call(
        functools.partial(_max_pool_kernel, n_hw=n_hw, rem=rem),
        out_shape=jax.ShapeDtypeStruct((B, C), jnp.float32),
        grid=(B, n_hw),
        in_specs=[pl.BlockSpec((1, C, hw_tile), lambda b, h: (b, 0, h))],
        out_specs=pl.BlockSpec((1, C), lambda b, h: (b, 0)),
        compiler_params=pltpu.CompilerParams(
            dimension_semantics=("parallel", "arbitrary"),
            vmem_limit_bytes=vmem_limit),
    )(x_flat)

    # (2) tiny MLP + sigmoid in plain XLA (far below MXU-useful size on any gen)
    hmid = jnp.maximum(pooled @ w1f + b1f, 0.0)
    scale = jax.nn.sigmoid(hmid @ w2f + b2f)           # (B, C) f32

    # (3) tiled gating pass, fully parallel over (B, HW tiles)
    y_flat = pl.pallas_call(
        _gate_kernel,
        out_shape=jax.ShapeDtypeStruct((B, C, hw), dtype),
        grid=(B, n_hw),
        in_specs=[
            pl.BlockSpec((1, C, hw_tile), lambda b, h: (b, 0, h)),
            pl.BlockSpec((1, C), lambda b, h: (b, 0)),
        ],
        out_specs=pl.BlockSpec((1, C, hw_tile), lambda b, h: (b, 0, h)),
        compiler_params=pltpu.CompilerParams(
            dimension_semantics=("parallel", "parallel"),
            vmem_limit_bytes=vmem_limit),
    )(x_flat, scale)
    return y_flat.reshape(B, C, H, W)


# ----------------------------------- reference --------------------------------------

def reference(x_nchw, w1, b1, w2, b2):
    pooled = jnp.max(x_nchw, axis=(2, 3))                        # (B, C)
    h = jnp.maximum(pooled @ w1 + b1, 0.0)                       # (B, Cr)
    att = h @ w2 + b2                                            # (B, C)
    scale = jax.nn.sigmoid(att)[:, :, None, None]
    return x_nchw * scale


if __name__ == "__main__":
    key = jax.random.PRNGKey(0)
    reduction_ratio = 16

    def run_case(name, shape, *, force_split=False, split_hw_tile=None, seed_offset=0):
        B, C, H, W = shape
        Cr = max(1, C // reduction_ratio)
        ks = jax.random.split(jax.random.fold_in(key, seed_offset), 5)
        x = jax.random.normal(ks[0], (B, C, H, W), dtype=jnp.float32)
        # Deterministic PyTorch-Linear-style init: U(-1/sqrt(fan_in), 1/sqrt(fan_in)).
        bound1 = 1.0 / math.sqrt(C)
        w1 = jax.random.uniform(ks[1], (C, Cr), jnp.float32, -bound1, bound1)
        b1 = jax.random.uniform(ks[2], (Cr,), jnp.float32, -bound1, bound1)
        bound2 = 1.0 / math.sqrt(Cr)
        w2 = jax.random.uniform(ks[3], (Cr, C), jnp.float32, -bound2, bound2)
        b2 = jax.random.uniform(ks[4], (C,), jnp.float32, -bound2, bound2)

        y = channel_gate(x, w1, b1, w2, b2,
                         force_split=force_split, split_hw_tile=split_hw_tile)
        jax.block_until_ready(y)
        y_ref = reference(x, w1, b1, w2, b2)
        assert y.shape == x.shape, f"{name}: shape mismatch {y.shape} vs {x.shape}"
        assert jnp.allclose(y, y_ref, atol=1e-5, rtol=1e-5), f"{name}: mismatch vs reference"

    # Fused path, lane-aligned spatial, batch-blocked grid (Bb=2 -> 2 grid steps).
    run_case("fused_aligned", (4, 32, 16, 16), seed_offset=0)
    # Fused path with non-128-aligned HW (7*7 = 49); no HBM pad, full-extent last dim.
    run_case("fused_unaligned", (2, 64, 7, 7), seed_offset=1)
    # Split path (tiled pool reduction + tiled gate), HW tiles divide evenly.
    run_case("split_even", (2, 64, 16, 16), force_split=True, split_hw_tile=128,
             seed_offset=2)
    # Split path with a masked partial edge tile (18*18 = 324 = 2*128 + 68).
    run_case("split_edge", (2, 64, 18, 18), force_split=True, split_hw_tile=128,
             seed_offset=3)

    print("KERNEL_OK")
</pallas_src>

<mosaic_0001>
module attributes {stable_mosaic.version = 11 : i64} {
  func.func @_fused_channel_gate_kernel(%arg0: i32, %arg1: memref<2x32x256xf32, #tpu.memory_space<vmem>>, %arg2: memref<32x2xf32, #tpu.memory_space<vmem>>, %arg3: memref<1x2xf32, #tpu.memory_space<vmem>>, %arg4: memref<2x32xf32, #tpu.memory_space<vmem>>, %arg5: memref<1x32xf32, #tpu.memory_space<vmem>>, %arg6: memref<2x32x256xf32, #tpu.memory_space<vmem>>) attributes {dimension_semantics = [#tpu.dimension_semantics<parallel>], iteration_bounds = array<i64: 2>, scalar_prefetch = 0 : i64, scratch_operands = 0 : i64, tpu.core_type = #tpu.core_type<tc>, window_params = [{transform_indices = @transform_0, window_bounds = array<i64: 2, 32, 256>}, {pipeline_mode = #tpu.pipeline_mode<synchronous>, transform_indices = @transform_1, window_bounds = array<i64: 32, 2>}, {pipeline_mode = #tpu.pipeline_mode<synchronous>, transform_indices = @transform_2, window_bounds = array<i64: 1, 2>}, {pipeline_mode = #tpu.pipeline_mode<synchronous>, transform_indices = @transform_3, window_bounds = array<i64: 2, 32>}, {pipeline_mode = #tpu.pipeline_mode<synchronous>, transform_indices = @transform_4, window_bounds = array<i64: 1, 32>}, {transform_indices = @transform_5, window_bounds = array<i64: 2, 32, 256>}]} {
    %c0 = arith.constant 0 : index
    %c0_0 = arith.constant 0 : index
    %c0_1 = arith.constant 0 : index
    %0 = vector.load %arg1[%c0, %c0_0, %c0_1] : memref<2x32x256xf32, #tpu.memory_space<vmem>>, vector<2x32x256xf32>
    %cst = arith.constant dense<0xFF800000> : vector<2x32xf32>
    %1 = vector.multi_reduction <maximumf>, %0, %cst [2] : vector<2x32x256xf32> to vector<2x32xf32>
    %c0_2 = arith.constant 0 : index
    %c0_3 = arith.constant 0 : index
    %2 = vector.load %arg2[%c0_2, %c0_3] : memref<32x2xf32, #tpu.memory_space<vmem>>, vector<32x2xf32>
    %cst_4 = arith.constant dense<0.000000e+00> : vector<2x2xf32>
    %3 = tpu.matmul %1, %2, %cst_4 {dimension_numbers = #tpu.dot_dimension_numbers<[1], [0], [0], [1], [0, 0, 1, 1], [], []>} : vector<2x32xf32>, vector<32x2xf32>, vector<2x2xf32> -> vector<2x2xf32>
    %c0_5 = arith.constant 0 : index
    %c0_6 = arith.constant 0 : index
    %4 = vector.load %arg3[%c0_5, %c0_6] : memref<1x2xf32, #tpu.memory_space<vmem>>, vector<1x2xf32>
    %5 = vector.broadcast %4 : vector<1x2xf32> to vector<2x2xf32>
    %6 = arith.addf %3, %5 : vector<2x2xf32>
    %cst_7 = arith.constant 0.000000e+00 : f32
    %7 = vector.broadcast %cst_7 : f32 to vector<2x2xf32>
    %8 = arith.maximumf %6, %7 : vector<2x2xf32>
    %c0_8 = arith.constant 0 : index
    %c0_9 = arith.constant 0 : index
    %9 = vector.load %arg4[%c0_8, %c0_9] : memref<2x32xf32, #tpu.memory_space<vmem>>, vector<2x32xf32>
    %cst_10 = arith.constant dense<0.000000e+00> : vector<2x32xf32>
    %10 = tpu.matmul %8, %9, %cst_10 {dimension_numbers = #tpu.dot_dimension_numbers<[1], [0], [0], [1], [0, 0, 1, 1], [], []>} : vector<2x2xf32>, vector<2x32xf32>, vector<2x32xf32> -> vector<2x32xf32>
    %c0_11 = arith.constant 0 : index
    %c0_12 = arith.constant 0 : index
    %11 = vector.load %arg5[%c0_11, %c0_12] : memref<1x32xf32, #tpu.memory_space<vmem>>, vector<1x32xf32>
    %12 = vector.broadcast %11 : vector<1x32xf32> to vector<2x32xf32>
    %13 = arith.addf %10, %12 : vector<2x32xf32>
    %14 = arith.negf %13 : vector<2x32xf32>
    %15 = math.exp %14 : vector<2x32xf32>
    %cst_13 = arith.constant 1.000000e+00 : f32
    %16 = vector.broadcast %cst_13 : f32 to vector<2x32xf32>
    %17 = arith.addf %16, %15 : vector<2x32xf32>
    %18 = arith.divf %16, %17 : vector<2x32xf32>
    %19 = vector.shape_cast %18 : vector<2x32xf32> to vector<2x32x1xf32>
    %20 = vector.broadcast %19 : vector<2x32x1xf32> to vector<2x32x256xf32>
    %21 = arith.mulf %0, %20 : vector<2x32x256xf32>
    %c0_14 = arith.constant 0 : index
    %c0_15 = arith.constant 0 : index
    %c0_16 = arith.constant 0 : index
    %22 = vector.load %arg6[%c0_14, %c0_15, %c0_16] : memref<2x32x256xf32, #tpu.memory_space<vmem>>, vector<2x32x256xf32>
    tpu.vector_store %arg6[%c0_14, %c0_15, %c0_16], %21 {strides = array<i32>} : memref<2x32x256xf32, #tpu.memory_space<vmem>>, vector<2x32x256xf32>,
    return
  }
  func.func @transform_0(%arg0: i32) -> (i32, i32, i32) {
    %c0_i32 = arith.constant 0 : i32
    %c0_i32_0 = arith.constant 0 : i32
    %c0_i32_1 = arith.constant 0 : i32
    return %arg0, %c0_i32, %c0_i32_0 : i32, i32, i32
  }
  func.func @transform_1(%arg0: i32) -> (i32, i32) {
    %c0_i32 = arith.constant 0 : i32
    %c0_i32_0 = arith.constant 0 : i32
    %c0_i32_1 = arith.constant 0 : i32
    return %c0_i32, %c0_i32_0 : i32, i32
  }
  func.func @transform_2(%arg0: i32) -> (i32, i32) {
    %c0_i32 = arith.constant 0 : i32
    %c0_i32_0 = arith.constant 0 : i32
    %c0_i32_1 = arith.constant 0 : i32
    return %c0_i32, %c0_i32_0 : i32, i32
  }
  func.func @transform_3(%arg0: i32) -> (i32, i32) {
    %c0_i32 = arith.constant 0 : i32
    %c0_i32_0 = arith.constant 0 : i32
    %c0_i32_1 = arith.constant 0 : i32
    return %c0_i32, %c0_i32_0 : i32, i32
  }
  func.func @transform_4(%arg0: i32) -> (i32, i32) {
    %c0_i32 = arith.constant 0 : i32
    %c0_i32_0 = arith.constant 0 : i32
    %c0_i32_1 = arith.constant 0 : i32
    return %c0_i32, %c0_i32_0 : i32, i32
  }
  func.func @transform_5(%arg0: i32) -> (i32, i32, i32) {
    %c0_i32 = arith.constant 0 : i32
    %c0_i32_0 = arith.constant 0 : i32
    %c0_i32_1 = arith.constant 0 : i32
    return %arg0, %c0_i32, %c0_i32_0 : i32, i32, i32
  }
}

</mosaic_0001>

<bundles_post_ra>
// kernel: tpu_custom_call.1
= control target key start
LH: loop header
LB: loop body
LE: loop exit
PB: predicated region body
PF: predicated region fallthrough
CT: control target
= control target key end

     0   :  { %10 = vsyncpa [#allocation3], 0  ;;  %s1196_s0 = inlined_call_operand.hbm [shape: f32[4,32,256], index: 0, kind: input, shape index: {}]   ;;  %s1197_s1 = inlined_call_operand.vmem [shape: f32[32,2], index: 1, kind: input, shape index: {}]   ;;  %s1198_s2 = inlined_call_operand.vmem [shape: f32[1,2], index: 2, kind: input, shape index: {}]   ;;  %s1199_s3 = inlined_call_operand.vmem [shape: f32[2,32], index: 3, kind: input, shape index: {}]   ;;  %s1200_s4 = inlined_call_operand.vmem [shape: f32[1,32], index: 4, kind: input, shape index: {}]   ;;  %s1201_s5 = inlined_call_operand.hbm [shape: f32[4,32,256], index: 5, kind: output, shape index: {}]  }
   0x1   :  { %12 = vsyncpa [#allocation3 + $0x1], 0 }
   0x2   :  { %13 = vsyncpa [#allocation4], 0 }
   0x3   :  { %15 = vsyncpa [#allocation4 + $0x1], 0  ;;  %s926_s18 = smov 0   ;;  %s928_s19 = smov 0  }
   0x4   :  { %s930_s20 = smov 0   ;;  %s932_s21 = smov 0  }
   0x5 LB: > { %s947_s22 = sadd.s32 4294967295, %s885_s21   ;;  %s677_s23 = sadd.s32 4294967294, %s885_s21   ;;  %s885_s21 = sphi %s932_s21, %s1214_s21   ;;  %s881_s20 = sphi %s930_s20, %s1213_s20   ;;  %s877_s19 = sphi %s928_s19, %s1212_s19   ;;  %s873_s18 = sphi %s926_s18, %s1211_s18  }
   0x6   : > { %s951_s24 = sadd.s32 1, %s885_s21   ;;  %s28_s25 = sadd.s32 1, %s881_s20 }
   0x7   : > { %s25_s26 = ssub.s32 %s885_s21, %s951_s24  ;;  %p35_p0 = scmp.ne.s32.totalorder %s881_s20, %s877_s19 }
   0x8   : > { %p26_p1 = scmp.eq.s32.totalorder %s25_s26, 0  ;;  %p36_p2 = scmp.eq.s32.totalorder %s885_s21, 0 }
   0x9   : > { %p41_p3 = scmp.ne.s32.totalorder %s877_s19, %s873_s18  ;;  %p42_p4 = scmp.eq.s32.totalorder %s947_s22, 0 }
   0xa   : > { %s963_s27 = scalar_select %p26_p1, %s881_s20, %s28_s25  }
   0xb   : > { %p965_p5 = por %p36_p2, %p35_p0  ;;  %p969_p6 = por %p42_p4, %p41_p3 }
   0xc   : > { %p149_p7 = scmp.eq.s32.totalorder %s947_s22, 1  ;;  %p155_p8 = scmp.eq.s32.totalorder %s677_s23, 1 }
   0xd   : > { %p744_p10 = scmp.lt.s32.totalorder %s885_s21, 2  ;;  %s187_s7 = sand.u32 1, %s881_s20  }
   0xe   : > { %p976_p11 = por %p149_p7, %p35_p0  ;;  %p980_p12 = por %p155_p8, %p41_p3 }
   0xf   : > { %s700_s8 = sshll.u32 %s885_s21, 11  ;;  %s680_s9 = sshll.u32 %s187_s7, 7 }
  0x10   : > { %s1205_s30 = scalar_select %p976_p11, 1, 0 }
  0x11   : > { %s1206_s6 = scalar_select %p980_p12, 1, 0 }
  0x12   : > { %s989_s12 = scalar_lea.hbm %s1196_s0, %s700_s8  ;;  %s191_s13 = scalar_lea.vmem [#allocation2], %s680_s9 }
  0x13   : > { %s199_s14 = sshll.u32 %s191_s13, 4  ;;  %p993_p13 = pnand %p744_p10, %p965_p5  ;;  %s997_s14 = int_to_ptr.vmem [resolvable:$true] %s199_s14 }
  0x14   : > { %s999_s16 = scalar_lea.sflag [#allocation3], %s187_s7  ;;  %s789_s17 = scalar_lea.hbm %s989_s12, 2048 }
  0x15   : > { %p790_p0 = scmp.ne.s32.totalorder %s989_s12, %s789_s17  ;;  %p791_p1 = pneg %p993_p13 }
  0x16   : > { %s794_s26 = scalar_lea.hbm %s1196_s0, 4096  ;;  %p795_p4 = scmp.lt.u32.totalorder %s989_s12, %s1196_s0 }
  0x17   : > { %p792_p2 = pnand %p791_p1, %p790_p0  ;;  %p796_p5 = scmp.lt.u32.totalorder %s794_s26, %s789_s17 }
  0x18   : > { %p798_p8 = scmp.lt.u32.totalorder %s789_s17, %s989_s12 }
  0x19   : > { %p793_p3 = pneg %p792_p2  ;;  %p797_p7 = por %p796_p5, %p795_p4 }
  0x1b   : > { %p799_p10 = por %p798_p8, %p797_p7 }
  0x1d   : > { %p800_p9 = pnand %p799_p10, %p793_p3 }
  0x1f   : > { %803 = shalt.err (!%p800_p9)
}
  0x20   : > { %s804_s7 = scalar_lea.vmem %s997_s14, 2048  ;;  %s887_s9 = smov [#allocation2]  }
  0x21   : > { %p805_p0 = scmp.ne.s32.totalorder %s997_s14, %s804_s7  ;;  %s809_s10 = sshll.u32 %s887_s9, 4  ;;  %s810_s10 = int_to_ptr.vmem [resolvable:$false] %s809_s10 }
  0x22   : > { %s811_s11 = scalar_lea.vmem %s810_s10, 4096  ;;  %p812_p11 = scmp.lt.s32.totalorder %s997_s14, %s810_s10 }
  0x23   : > { %p807_p2 = pnand %p805_p0, %p791_p1  ;;  %p813_p4 = scmp.lt.s32.totalorder %s811_s11, %s804_s7 }
  0x25   : > { %p808_p12 = pneg %p807_p2  ;;  %p814_p5 = por %p813_p4, %p812_p11 }
  0x27   : > { %p815_p7 = pnand %p814_p5, %p808_p12 }
  0x29   : > { %818 = shalt.err (!%p815_p7)
}
  0x2a   : > { %s888_s13 = smov 256   ;;  %s889_s17 = smov 16  }
  0x2b   : > { %739 = dma.hbm_to_vmem [thread:$0]  (!%p993_p13), %s989_s12, 2048, %s997_s14, %s999_s16, %s888_s13, %s888_s13, %s889_s17  }
  0x2c   : > { %p684_p9 = scmp.ge.s32.totalorder %s885_s21, 1  ;;  %p207_p1 = scmp.lt.s32.totalorder %s885_s21, 3 }
  0x2e   : > { %p208_p3 = pnand %p684_p9, %p207_p1 }
  0x2f   : > { %s1030_s23 = sand.u32 (!%p208_p3), 1, %s877_s19  }
  0x30   : > { %211 = sbr.rel (%p208_p3) target bundleno = 824 (0x338), region = 40  ;;  %s685_s25 = sshll.u32 (!%p208_p3), %s1030_s23, 7 }
  0x31   : > { %s214_s26 = scalar_lea.sflag (!%p208_p3), [#allocation3], %s1030_s23  ;;  %s217_s28 = scalar_lea.vmem (!%p208_p3), [#allocation2], %s685_s25 }
  0x37   : > { %864 = dma.done.wait (%p969_p6), %s214_s26, 2048  }
  0x38   : > { %866 = vsyncadd (%p969_p6), %s214_s26, 4294965248  ;;  %v1040_v0 = vld [vmem:[%s217_s28 + $0x40] sm:$0xff]  ;;  %v1042_v1 = vld [vmem:[%s217_s28 + $0x48] sm:$0xff]  ;;  %v890_v27 = vmov 0.0|0.0   ;;  %vm891_vm0 = vmmov 0   ;;  %v892_v31 = vmov 0.0   ;;  %v305_v32 = vlaneseq }
  0x39   : > { %v1044_v2 = vld [vmem:[%s217_s28] sm:$0xff]  ;;  %v274_v3 = vmax.f32 %v1040_v0, %v1042_v1  ;;  %v1048_v4 = vld [vmem:[%s217_s28 + $0x8] sm:$0xff]  ;;  %v1050_v5 = vld [vmem:[%s217_s28 + $0x50] sm:$0xff]  ;;  %726 = vmatprep.subr.bf16.mxu0 %v890_v27  ;;  %718 = vmatprep.mubr.msk.f32.mxu0 %vm891_vm0, %v892_v31  ;;  %vm316_vm1 = vcmask 130112   ;;  %vm323_vm2 = vcmask 195712   ;;  %vm330_vm3 = vcmask 261312  }
  0x3a   : > { %v1052_v6 = vld [vmem:[%s217_s28 + $0x58] sm:$0xff]  ;;  %v262_v7 = vmax.f32 %v1044_v2, %v1048_v4  ;;  %v1056_v8 = vld [vmem:[%s217_s28 + $0x10] sm:$0xff]  ;;  %v1064_v12 = vld [vmem:[%s217_s28 + $0x60] sm:$0xff]  ;;  %721 = vmatprep.subr.mxu1 %v892_v31  ;;  %723 = vmatprep.mubr.msk.f32.mxu1 %vm891_vm0, %v892_v31  ;;  %v306_v33 = vand.u32 127, %v305_v32  ;;  %v308_v38 = vshrl.u32 %v305_v32, 7  ;;  %vm351_vm4 = vcmask 1041409  }
  0x3b   : > { %v1058_v9 = vld [vmem:[%s217_s28 + $0x18] sm:$0xff]  ;;  %275 = vmax.xlane.f32.xlu1 %v274_v3  ;;  %v277_v10 = vmax.f32 %v1050_v5, %v1052_v6  ;;  %v1066_v13 = vld [vmem:[%s217_s28 + $0x68] sm:$0xff]  ;;  %v1068_v14 = vld [vmem:[%s217_s28 + $0x20] sm:$0xff]  ;;  %vm353_vm5 = vcmask 261120   ;;  %vm439_vm6 = vcmask 1041408   ;;  %vm435_vm7 = vcmask 15360  }
  0x3c   : > { %263 = vmax.xlane.f32.xlu0 %v262_v7  ;;  %v265_v11 = vmax.f32 %v1056_v8, %v1058_v9  ;;  %v1070_v15 = vld [vmem:[%s217_s28 + $0x28] sm:$0xff]  ;;  %v280_v16 = vmax.f32 %v1064_v12, %v1066_v13  ;;  %v1076_v18 = vld [vmem:[%s217_s28 + $0x70] sm:$0xff]  ;;  %v1078_v19 = vld [vmem:[%s217_s28 + $0x78] sm:$0xff]  ;;  %v311_v36 = vadd.s32 4294967288, %v306_v33  ;;  %v318_v37 = vadd.s32 4294967280, %v306_v33  ;;  %s1115_s29 = scalar_lea.vmem [#allocation5], %s685_s25 }
  0x3d   : > { %v268_v17 = vmax.f32 %v1068_v14, %v1070_v15  ;;  %v1080_v20 = vld [vmem:[%s217_s28 + $0x30] sm:$0xff]  ;;  %v1082_v21 = vld [vmem:[%s217_s28 + $0x38] sm:$0xff]  ;;  %v283_v22 = vmax.f32 %v1076_v18, %v1078_v19  ;;  %v286_v24 = vld [vmem:[%s1197_s1] sm:$0xff]  ;;  %v325_v42 = vadd.s32 4294967272, %v306_v33  ;;  %v309_v44 = vsub.s32 %v306_v33, %v308_v38  ;;  %s702_s25 = sshll.u32 %s947_s22, 11  ;;  %s604_s12 = sshll.u32 %s1115_s29, 4  ;;  %s1148_s12 = int_to_ptr.vmem [resolvable:$true] %s604_s12 }
  0x3e   : > { %v271_v23 = vmax.f32 %v1080_v20, %v1082_v21  ;;  %v287_v25 = vld [vmem:[%s1197_s1 + $0x8] sm:$0xff]  ;;  %v288_v28 = vld [vmem:[%s1197_s1 + $0x10] sm:$0xff]  ;;  %v289_v29 = vld [vmem:[%s1197_s1 + $0x18] sm:$0xff]  ;;  %v314_v40 = vsub.s32 %v311_v36, %v308_v38  ;;  %v321_v43 = vsub.s32 %v318_v37, %v308_v38  ;;  %v540_v33 = vsub.s32 1, %v308_v38  ;;  %s1146_s16 = scalar_lea.hbm %s1201_s5, %s702_s25  ;;  %s590_s22 = scalar_lea.sflag [#allocation4], %s1030_s23 }
  0x3f   : > { %278 = vmax.xlane.f32.xlu1 %v277_v10  ;;  %v727_v26 = vpack.c.bf16 %v287_v25, %v286_v24  ;;  %v730_v30 = vpack.c.bf16 %v289_v29, %v288_v28  ;;  %v328_v48 = vsub.s32 %v325_v42, %v308_v38  ;;  %v427_v7 = vld [vmem:[%s1199_s3] sm:$0x3]  ;;  %s819_s8 = scalar_lea.vmem %s1148_s12, 2048  ;;  %p1208_p11 = scmp.ne.s32.totalorder %s1205_s30, 0 }
  0x40   : > { %266 = vmax.xlane.f32.xlu0 %v265_v11  ;;  %722 = vmatpush3.msk.msra.mxu1 %vm439_vm6, %v427_v7  ;;  %v687_v10 = vld [vmem:[%s1198_s2] ss:$0 sm:$0xff]  ;;  %p820_p6 = scmp.ne.s32.totalorder %s1148_s12, %s819_s8  ;;  %s893_s7 = smov [#allocation5]  }
  0x41   : > { %728 = vmatpush3.bf16.msra.mxu0 %v727_v26  ;;  %s823_s9 = sshll.u32 %s893_s7, 4  ;;  %s824_s9 = int_to_ptr.vmem [resolvable:$false] %s823_s9 }
  0x42   : > { %729 = vmatprep.subr.bf16.mxu0 %v890_v27  ;;  %p821_p12 = pnand %p820_p6, %p1208_p11  ;;  %s825_s10 = scalar_lea.vmem %s824_s9, 4096 }
  0x43   : > { %281 = vmax.xlane.f32.xlu1 %v280_v16  ;;  %p826_p8 = scmp.lt.s32.totalorder %s1148_s12, %s824_s9  ;;  %p827_p10 = scmp.lt.s32.totalorder %s825_s10, %s819_s8 }
  0x44   : > { %269 = vmax.xlane.f32.xlu0 %v268_v17  ;;  %p822_p13 = pneg %p821_p12 }
  0x45   : > { %731 = vmatpush3.bf16.msra.mxu0 %v730_v30  ;;  %v521_v30 = vsub.s32 0, %v308_v38  ;;  %p828_p0 = por %p827_p10, %p826_p8 }
  0x47   : > { %284 = vmax.xlane.f32.xlu1 %v283_v22  ;;  %p829_p2 = pnand %p828_p0, %p822_p13 }
  0x48   : > { %272 = vmax.xlane.f32.xlu0 %v271_v23  ;;  %v689_v23 = vld [vmem:[%s1200_s4] ss:$0 sm:$0xff] }
  0xc8   : > { %v276_v34 = vpop.xlane.xlu1 %275 }
  0xc9   : > { %v264_v35 = vpop.xlane.xlu0 %263  ;;  %v335_v51 = vrot.slane %v276_v34, %v309_v44 }
  0xca   : > { %v310_v53 = vrot.slane %v264_v35, %v309_v44 }
  0xcc   : > { %v279_v39 = vpop.xlane.xlu1 %278 }
  0xcd   : > { %v267_v41 = vpop.xlane.xlu0 %266  ;;  %v339_v46 = vrot.slane %v279_v39, %v314_v40 }
  0xce   : > { %v315_v49 = vrot.slane %v267_v41, %v314_v40 }
  0xcf   : > { %v340_v55 = vsel %vm316_vm1, %v339_v46, %v335_v51 }
  0xd0   : > { %v282_v45 = vpop.xlane.xlu1 %281  ;;  %v317_v58 = vsel %vm316_vm1, %v315_v49, %v310_v53 }
  0xd1   : > { %v270_v47 = vpop.xlane.xlu0 %269  ;;  %v344_v50 = vrot.slane %v282_v45, %v321_v43 }
  0xd2   : > { %v322_v52 = vrot.slane %v270_v47, %v321_v43 }
  0xd3   : > { %v345_v59 = vsel %vm323_vm2, %v344_v50, %v340_v55 }
  0xd4   : > { %v285_v54 = vpop.xlane.xlu1 %284  ;;  %v324_v61 = vsel %vm323_vm2, %v322_v52, %v317_v58 }
  0xd5   : > { %v349_v56 = vrot.slane %v285_v54, %v328_v48  ;;  %v273_v57 = vpop.xlane.xlu0 %272 }
  0xd6   : > { %v329_v60 = vrot.slane %v273_v57, %v328_v48 }
  0xd7   : > { %v350_v62 = vsel %vm330_vm3, %v349_v56, %v345_v59 }
  0xd8   : > { %v331_v63 = vsel %vm330_vm3, %v329_v60, %v324_v61 }
  0xd9   : > { %v352_v3 = vsel %vm351_vm4, %v350_v62, %v331_v63 }
  0xda   : > { %719 = vmatmul.mubr.msk.f32.vlgmr.msra.gmra.mrb[0].mxu0 %vm353_vm5, %v352_v3 }
 0x1ad   : > { %v422_v11 = vpop.f32.mrb[0].mxu0 }
 0x1ae   : > { %v423_v16 = vadd.f32 %v687_v10, %v422_v11  ;;  %v720_v17 = vpop.f32.mrb[1].mxu0 }
 0x1b0   : > { %v426_v22 = vmax.f32 %v423_v16, 0.0 }
 0x1b2   : > { %724 = vmatmul.mubr.msk.f32.vlgmr.msra.gmra.mrb[0].mxu1 %vm435_vm7, %v426_v22 }
 0x285   : > { %v509_v24 = vpop.f32.mrb[0].mxu1 }
 0x286   : > { %v510_v25 = vadd.f32 %v689_v23, %v509_v24  ;;  %v725_v26 = vpop.f32.mrb[1].mxu1 }
 0x288   : > { %v692_v27 = vmul.f32 -1.442695, %v510_v25 }
 0x28a   : > { %785 = vpow2.f32 %v692_v27 }
 0x294   : > { %v786_v28 = vpop.eup %785 }
 0x295   : > { %v516_v29 = vadd.f32 1.0, %v786_v28 }
 0x297   : > { %787 = vrcp.f32 %v516_v29 }
 0x2a1   : > { %v788_v31 = vpop.eup %787 }
 0x2a2   : > { %v522_v32 = vrot.slane %v788_v31, %v521_v30  ;;  %v541_v34 = vrot.slane %v788_v31, %v540_v33 }
 0x2a4   : > { %528 = vbcast.lane.b32.xlu1 %v522_v32, 264  ;;  %524 = vbcast.lane.b32.xlu0 %v522_v32, 256 }
 0x2a8   : > { %532 = vbcast.lane.b32.xlu1 %v522_v32, 272  ;;  %543 = vbcast.lane.b32.xlu0 %v541_v34, 256 }
 0x2ac   : > { %536 = vbcast.lane.b32.xlu1 %v522_v32, 280  ;;  %551 = vbcast.lane.b32.xlu0 %v541_v34, 272 }
 0x2b0   : > { %547 = vbcast.lane.b32.xlu1 %v541_v34, 264 }
 0x2b4   : > { %555 = vbcast.lane.b32.xlu1 %v541_v34, 280 }
 0x316   : > { %v529_v35 = vpop.permute.xlu1 %528  ;;  %v525_v36 = vpop.permute.xlu0 %524 }
 0x317   : > { %v559_v37 = vmul.f32 %v529_v35, %v1056_v8  ;;  %v560_v39 = vmul.f32 %v529_v35, %v1058_v9  ;;  %v557_v40 = vmul.f32 %v525_v36, %v1044_v2  ;;  %v558_v38 = vmul.f32 %v525_v36, %v1048_v4 }
 0x319   : > { %575 = vst [vmem:[%s1115_s29 + $0x10] sm:$0xff] %v559_v37  ;;  %576 = vst [vmem:[%s1115_s29 + $0x18] sm:$0xff] %v560_v39 }
 0x31a   : > { %573 = vst [vmem:[%s1115_s29] sm:$0xff] %v557_v40  ;;  %574 = vst [vmem:[%s1115_s29 + $0x8] sm:$0xff] %v558_v38  ;;  %v533_v8 = vpop.permute.xlu1 %532  ;;  %v544_v2 = vpop.permute.xlu0 %543 }
 0x31b   : > { %v561_v4 = vmul.f32 %v533_v8, %v1068_v14  ;;  %v562_v9 = vmul.f32 %v533_v8, %v1070_v15  ;;  %v565_v41 = vmul.f32 %v544_v2, %v1040_v0  ;;  %v566_v42 = vmul.f32 %v544_v2, %v1042_v1 }
 0x31d   : > { %577 = vst [vmem:[%s1115_s29 + $0x20] sm:$0xff] %v561_v4  ;;  %578 = vst [vmem:[%s1115_s29 + $0x28] sm:$0xff] %v562_v9 }
 0x31e   : > { %581 = vst [vmem:[%s1115_s29 + $0x40] sm:$0xff] %v565_v41  ;;  %582 = vst [vmem:[%s1115_s29 + $0x48] sm:$0xff] %v566_v42  ;;  %v537_v43 = vpop.permute.xlu1 %536  ;;  %v552_v44 = vpop.permute.xlu0 %551 }
 0x31f   : > { %v563_v14 = vmul.f32 %v537_v43, %v1080_v20  ;;  %v564_v45 = vmul.f32 %v537_v43, %v1082_v21  ;;  %v569_v15 = vmul.f32 %v552_v44, %v1064_v12  ;;  %v570_v0 = vmul.f32 %v552_v44, %v1066_v13 }
 0x321   : > { %579 = vst [vmem:[%s1115_s29 + $0x30] sm:$0xff] %v563_v14  ;;  %580 = vst [vmem:[%s1115_s29 + $0x38] sm:$0xff] %v564_v45 }
 0x322   : > { %585 = vst [vmem:[%s1115_s29 + $0x60] sm:$0xff] %v569_v15  ;;  %586 = vst [vmem:[%s1115_s29 + $0x68] sm:$0xff] %v570_v0  ;;  %v548_v1 = vpop.permute.xlu1 %547 }
 0x323   : > { %v567_v46 = vmul.f32 %v548_v1, %v1050_v5  ;;  %v568_v47 = vmul.f32 %v548_v1, %v1052_v6 }
 0x325   : > { %583 = vst [vmem:[%s1115_s29 + $0x50] sm:$0xff] %v567_v46  ;;  %584 = vst [vmem:[%s1115_s29 + $0x58] sm:$0xff] %v568_v47 }
 0x326   : > { %v556_v12 = vpop.permute.xlu1 %555 }
 0x327   : > { %v571_v5 = vmul.f32 %v556_v12, %v1076_v18  ;;  %v572_v13 = vmul.f32 %v556_v12, %v1078_v19 }
 0x329   : > { %587 = vst [vmem:[%s1115_s29 + $0x70] sm:$0xff] %v571_v5  ;;  %588 = vst [vmem:[%s1115_s29 + $0x78] sm:$0xff] %v572_v13 }
 0x32a   : > { %832 = shalt.err (!%p829_p2)
}
 0x32b   : > { %s833_s11 = scalar_lea.hbm %s1146_s16, 2048  ;;  %s837_s26 = scalar_lea.hbm %s1201_s5, 4096 }
 0x32c   : > { %p834_p4 = scmp.ne.s32.totalorder %s1146_s16, %s833_s11  ;;  %p838_p9 = scmp.lt.u32.totalorder %s1146_s16, %s1201_s5 }
 0x32d   : > { %p839_p1 = scmp.lt.u32.totalorder %s837_s26, %s833_s11  ;;  %p841_p6 = scmp.lt.u32.totalorder %s833_s11, %s1146_s16 }
 0x32e   : > { %p835_p5 = pnand %p834_p4, %p1208_p11 }
 0x32f   : > { %p840_p3 = por %p839_p1, %p838_p9 }
 0x330   : > { %p836_p7 = pneg %p835_p5 }
 0x331   : > { %p842_p12 = por %p841_p6, %p840_p3 }
 0x333   : > { %p843_p13 = pnand %p842_p12, %p836_p7 }
 0x335   : > { %846 = shalt.err (!%p843_p13)
}
 0x336   : > { %s894_s25 = smov 256   ;;  %s895_s14 = smov 16  }
 0x337   : > { %734 = dma.vmem_to_hbm [thread:$0]  (%p1208_p11), %s1148_s12, 2048, %s1146_s16, %s590_s22, %s894_s25, %s894_s25, %s895_s14  }
 0x338 PF: > { %s619_s15 = sand.u32 1, %s873_s18   ;;  %p1209_p8 = scmp.ne.s32.totalorder %s1206_s6, 0 }
 0x339   : > { %p1210_p10 = scmp.ge.s32.totalorder %s885_s21, 2  ;;  %s620_s8 = scalar_lea.sflag [#allocation4], %s619_s15 }
 0x33b   : > { %p741_p0 = pnand %p1210_p10, %p1209_p8 }
 0x33d   : > { %868 = dma.done.wait (!%p741_p0), %s620_s8, 2048  }
 0x33e   : > { %870 = vsyncadd (!%p741_p0), %s620_s8, 4294965248  ;;  %p18_p2 = scmp.ge.s32.totalorder %s951_s24, 4   ;;  %s1211_s18 = smov %s877_s19 }
 0x33f   : > { %s1212_s19 = smov %s881_s20  ;;  %s1213_s20 = smov %s963_s27 }
 0x340   : > { %s1214_s21 = smov %s951_s24  ;;  %20 = sbr.rel (!%p18_p2) target bundleno = 5 (0x5), region = 85 }
 0x347   :  { %625 = vsyncpa [#allocation3], 1 }
 0x348   :  { %627 = vsyncpa [#allocation3 + $0x1], 1 }
 0x349   :  { %628 = vsyncpa [#allocation4], 1 }
 0x34a   :  { %630 = vsyncpa [#allocation4 + $0x1], 1 }

</bundles_post_ra>
